<compile_context>
chip_gen: v7x
topology: tpu7x:2x2x1
jax: 0.10.0
libtpu: 0.0.40
codegen_flags: <defaults>
</compile_context>

<pallas_src>
import jax
import jax.numpy as jnp
from jax import lax
from jax.experimental import pallas as pl
from jax.experimental.pallas import tpu as pltpu


def latent_kernel(h_ref, w_cat_ref, b_cat_ref, eps_ref,
                  rhs_att_ref, rhs_avg_ref, const_att_ref, const_avg_ref,
                  z_ref, loss_ref):
    f32 = jnp.float32
    dn = (((1,), (1,)), ((), ()))     # contract last dims: (B,K) x (C,K) -> (B,C)

    h = h_ref[...]                    # (B, H)
    B, H = h.shape
    C = rhs_att_ref.shape[0]
    inv_H = 1.0 / H                   # exact powers of two at these sizes
    inv_B = 1.0 / B
    inv_C = 1.0 / C

    # --- fused Linear layers: one MXU pass, N = 2H ---------------------------
    y = lax.dot_general(h, w_cat_ref[...], dn,
                        preferred_element_type=f32) + b_cat_ref[...]   # (B, 2H)
    mu_z = y[:, :H]                   # cal_mu_z(h)
    ls_z = y[:, H:]                   # cal_log_sigma_z(h)

    # --- reparameterisation: single EUP pass ---------------------------------
    s = jnp.exp(0.5 * ls_z)           # == sqrt(exp(ls_z))
    z = mu_z + s * eps_ref[...]       # (B, H)
    z_ref[...] = z
    exp_ls_z = s * s                  # == exp(ls_z), no second exp

    # --- cluster attention (one K=2H matmul + per-cluster constant row) ------
    # att_logits[b,c] = -sum_h (z - mu_c)^2 / exp(ls_c)
    #                 = -( [z^2, z] . [1/sig_c, -2*mu_c/sig_c] + sum_h mu_c^2/sig_c )
    lhs_att = jnp.concatenate([z * z, z], axis=1)                       # (B, 2H)
    att_logits = -(lax.dot_general(lhs_att, rhs_att_ref[...], dn,
                                   preferred_element_type=f32)
                   + const_att_ref[...])                                # (B, C)

    # F.softmax on a 2-D tensor defaults to dim=1 (over clusters); + 1e-10
    m = jnp.max(att_logits, axis=-1, keepdims=True)
    e = jnp.exp(att_logits - m)
    att = e / jnp.sum(e, axis=-1, keepdims=True) + 1e-10                # (B, C)

    # --- latent loss (one K=3H matmul) ----------------------------------------
    # avg_[b,c] = mean_h( ls_c + exp(ls_z)/exp(ls_c) + (mu_z - mu_c)^2 / exp(ls_c) )
    lhs_avg = jnp.concatenate([exp_ls_z, mu_z * mu_z, mu_z], axis=1)    # (B, 3H)
    avg_ = (lax.dot_general(lhs_avg, rhs_avg_ref[...], dn,
                            preferred_element_type=f32)
            + const_avg_ref[...]) * inv_H                               # (B, C)

    sum_kd = jnp.sum(att * avg_, axis=-1, keepdims=True)                # (B, 1)
    mean_kd = jnp.sum(1.0 + ls_z, axis=-1, keepdims=True) * inv_H       # (B, 1)
    latent = jnp.sum(0.5 * (sum_kd - mean_kd), axis=0,
                     keepdims=True) * inv_B                             # (1, 1)

    # --- categorical loss ------------------------------------------------------
    cate_mean = jnp.sum(att, axis=0, keepdims=True) * inv_B             # (1, C)
    cate = jnp.sum(cate_mean * jnp.log(cate_mean), axis=1,
                   keepdims=True) * inv_C                               # (1, 1)

    # --- pack the two scalars into one lane-dense (1, 128) output ------------
    lane = lax.broadcasted_iota(jnp.int32, loss_ref.shape, 1)
    loss_ref[...] = (jnp.where(lane == 0, latent, 0.0)
                     + jnp.where(lane == 1, cate, 0.0))


def _prepare_params(params):
    """Weight-like preprocessing (batch independent, hoisted out of the kernel)."""
    w_cat = jnp.concatenate([params["w_mu"], params["w_ls"]], axis=0)   # (2H, H)
    b_cat = jnp.concatenate([params["b_mu"], params["b_ls"]], axis=1)   # (1, 2H)
    mu_c = params["mu_c"]                                               # (C, H)
    ls_c = params["log_sigma_sq_c"]                                     # (C, H)
    inv_sig_c = jnp.exp(-ls_c)
    mcw = mu_c * inv_sig_c
    rhs_att = jnp.concatenate([inv_sig_c, -2.0 * mcw], axis=1)              # (C, 2H)
    rhs_avg = jnp.concatenate([inv_sig_c, inv_sig_c, -2.0 * mcw], axis=1)   # (C, 3H)
    const_att = jnp.sum(mu_c * mcw, axis=1, keepdims=True).T                # (1, C)
    const_avg = const_att + jnp.sum(ls_c, axis=1, keepdims=True).T          # (1, C)
    return w_cat, b_cat, rhs_att, rhs_avg, const_att, const_avg


def latent_distribution_forward(h, params, eps):
    """Forward pass of LatentDistribution in 'train' mode.

    Returns (z, batch_latent_loss, batch_cate_loss).
    eps plays the role of torch.rand(size=log_sigma_sq_z.shape) and is supplied
    externally for determinism.
    """
    h2 = jnp.squeeze(h)                      # mirrors torch h.squeeze()
    B, H = h2.shape
    C = params["mu_c"].shape[0]
    w_cat, b_cat, rhs_att, rhs_avg, const_att, const_avg = _prepare_params(params)

    def full(shape):
        return pl.BlockSpec(shape, lambda i, _s=shape: (0,) * len(_s))

    out_shapes = (jax.ShapeDtypeStruct((B, H), jnp.float32),
                  jax.ShapeDtypeStruct((1, 128), jnp.float32))

    z, losses = pl.pallas_call(
        latent_kernel,
        grid=(1,),
        in_specs=[full((B, H)),          # h
                  full((2 * H, H)),      # W_cat = [W_mu; W_ls]
                  full((1, 2 * H)),      # b_cat = [b_mu, b_ls]
                  full((B, H)),          # eps
                  full((C, 2 * H)),      # rhs_att
                  full((C, 3 * H)),      # rhs_avg
                  full((1, C)),          # const_att
                  full((1, C))],         # const_avg
        out_specs=(full((B, H)), full((1, 128))),
        out_shape=out_shapes,
        compiler_params=pltpu.CompilerParams(dimension_semantics=("arbitrary",)),
    )(h2, w_cat, b_cat, eps, rhs_att, rhs_avg, const_att, const_avg)
    return z, losses[0, 0], losses[0, 1]


def reference_forward(h, params, eps):
    """Pure-JAX reference mirroring the torch forward ('train')."""
    h = jnp.squeeze(h)
    mu_z = h @ params["w_mu"].T + params["b_mu"][0]
    ls_z = h @ params["w_ls"].T + params["b_ls"][0]
    z = mu_z + jnp.sqrt(jnp.exp(ls_z)) * eps
    mu_c, ls_c = params["mu_c"], params["log_sigma_sq_c"]
    diff = z[:, None, :] - mu_c[None]
    att_logits = -jnp.sum(diff ** 2 / jnp.exp(ls_c)[None], axis=-1)
    att = jax.nn.softmax(att_logits, axis=-1) + 1e-10
    avg_ = jnp.mean(ls_c[None]
                    + jnp.exp(ls_z)[:, None, :] / jnp.exp(ls_c)[None]
                    + (mu_z[:, None, :] - mu_c[None]) ** 2 / jnp.exp(ls_c)[None],
                    axis=-1)
    sum_ = jnp.sum(att * avg_, axis=-1)
    mean_ = jnp.mean(1.0 + ls_z, axis=-1)
    latent = jnp.mean(0.5 * sum_ - 0.5 * mean_)
    cate_mean = jnp.mean(att, axis=0)
    cate = jnp.mean(cate_mean * jnp.log(cate_mean))
    return z, latent, cate


if __name__ == "__main__":
    B, C, H = 8, 4, 32

    key = jax.random.PRNGKey(0)
    k_h, k_eps, k_muc, k_wmu, k_wls = jax.random.split(key, 5)

    # Deterministic synthetic parameters (module __init__ without the .pt file):
    #   mu_c ~ U[0,1), log_sigma_sq_c = 0, Linear weights ~ N(0, 0.02), biases = 0.
    # TODO(synk): torch.load('init_latent.pt') path intentionally skipped (synthetic init).
    params = {
        "mu_c": jax.random.uniform(k_muc, (C, H), jnp.float32),
        "log_sigma_sq_c": jnp.zeros((C, H), jnp.float32),
        "w_mu": 0.02 * jax.random.normal(k_wmu, (H, H), jnp.float32),
        "b_mu": jnp.zeros((1, H), jnp.float32),
        "w_ls": 0.02 * jax.random.normal(k_wls, (H, H), jnp.float32),
        "b_ls": jnp.zeros((1, H), jnp.float32),
    }

    h = jax.random.normal(k_h, (B, 1, H), jnp.float32)          # squeezed to (B, H) inside
    eps = jax.random.uniform(k_eps, (B, H), jnp.float32)        # stands in for torch.rand

    z, latent_loss, cate_loss = latent_distribution_forward(h, params, eps)
    jax.block_until_ready((z, latent_loss, cate_loss))

    z_ref, latent_ref, cate_ref = reference_forward(h, params, eps)
    assert jnp.allclose(z, z_ref, rtol=1e-4, atol=1e-5), "z mismatch"
    assert jnp.allclose(latent_loss, latent_ref, rtol=1e-4, atol=1e-5), "latent loss mismatch"
    assert jnp.allclose(cate_loss, cate_ref, rtol=1e-4, atol=1e-5), "cate loss mismatch"

    print("KERNEL_OK")
</pallas_src>

<mosaic_0001>
module attributes {stable_mosaic.version = 11 : i64} {
  func.func @latent_kernel(%arg0: i32, %arg1: memref<8x32xf32, #tpu.memory_space<vmem>>, %arg2: memref<64x32xf32, #tpu.memory_space<vmem>>, %arg3: memref<1x64xf32, #tpu.memory_space<vmem>>, %arg4: memref<8x32xf32, #tpu.memory_space<vmem>>, %arg5: memref<4x64xf32, #tpu.memory_space<vmem>>, %arg6: memref<4x96xf32, #tpu.memory_space<vmem>>, %arg7: memref<1x4xf32, #tpu.memory_space<vmem>>, %arg8: memref<1x4xf32, #tpu.memory_space<vmem>>, %arg9: memref<8x32xf32, #tpu.memory_space<vmem>>, %arg10: memref<1x128xf32, #tpu.memory_space<vmem>>) attributes {dimension_semantics = [#tpu.dimension_semantics<arbitrary>], iteration_bounds = array<i64: 1>, scalar_prefetch = 0 : i64, scratch_operands = 0 : i64, tpu.core_type = #tpu.core_type<tc>, window_params = [{pipeline_mode = #tpu.pipeline_mode<synchronous>, transform_indices = @transform_0, window_bounds = array<i64: 8, 32>}, {pipeline_mode = #tpu.pipeline_mode<synchronous>, transform_indices = @transform_1, window_bounds = array<i64: 64, 32>}, {pipeline_mode = #tpu.pipeline_mode<synchronous>, transform_indices = @transform_2, window_bounds = array<i64: 1, 64>}, {pipeline_mode = #tpu.pipeline_mode<synchronous>, transform_indices = @transform_3, window_bounds = array<i64: 8, 32>}, {pipeline_mode = #tpu.pipeline_mode<synchronous>, transform_indices = @transform_4, window_bounds = array<i64: 4, 64>}, {pipeline_mode = #tpu.pipeline_mode<synchronous>, transform_indices = @transform_5, window_bounds = array<i64: 4, 96>}, {pipeline_mode = #tpu.pipeline_mode<synchronous>, transform_indices = @transform_6, window_bounds = array<i64: 1, 4>}, {pipeline_mode = #tpu.pipeline_mode<synchronous>, transform_indices = @transform_7, window_bounds = array<i64: 1, 4>}, {pipeline_mode = #tpu.pipeline_mode<synchronous>, transform_indices = @transform_8, window_bounds = array<i64: 8, 32>}, {pipeline_mode = #tpu.pipeline_mode<synchronous>, transform_indices = @transform_9, window_bounds = array<i64: 1, 128>}]} {
    %c0 = arith.constant 0 : index
    %c0_0 = arith.constant 0 : index
    %0 = vector.load %arg1[%c0, %c0_0] : memref<8x32xf32, #tpu.memory_space<vmem>>, vector<8x32xf32>
    %c0_1 = arith.constant 0 : index
    %c0_2 = arith.constant 0 : index
    %1 = vector.load %arg2[%c0_1, %c0_2] : memref<64x32xf32, #tpu.memory_space<vmem>>, vector<64x32xf32>
    %cst = arith.constant dense<0.000000e+00> : vector<8x64xf32>
    %2 = tpu.matmul %0, %1, %cst {dimension_numbers = #tpu.dot_dimension_numbers<[1], [1], [0], [0], [0, 0, 1, 0], [], []>} : vector<8x32xf32>, vector<64x32xf32>, vector<8x64xf32> -> vector<8x64xf32>
    %c0_3 = arith.constant 0 : index
    %c0_4 = arith.constant 0 : index
    %3 = vector.load %arg3[%c0_3, %c0_4] : memref<1x64xf32, #tpu.memory_space<vmem>>, vector<1x64xf32>
    %4 = vector.broadcast %3 : vector<1x64xf32> to vector<8x64xf32>
    %5 = arith.addf %2, %4 : vector<8x64xf32>
    %6 = vector.extract_strided_slice %5 {offsets = [0, 0], sizes = [8, 32], strides = [1, 1]} : vector<8x64xf32> to vector<8x32xf32>
    %7 = vector.extract_strided_slice %5 {offsets = [0, 32], sizes = [8, 32], strides = [1, 1]} : vector<8x64xf32> to vector<8x32xf32>
    %cst_5 = arith.constant 5.000000e-01 : f32
    %8 = vector.broadcast %cst_5 : f32 to vector<8x32xf32>
    %9 = arith.mulf %8, %7 : vector<8x32xf32>
    %10 = math.exp %9 : vector<8x32xf32>
    %c0_6 = arith.constant 0 : index
    %c0_7 = arith.constant 0 : index
    %11 = vector.load %arg4[%c0_6, %c0_7] : memref<8x32xf32, #tpu.memory_space<vmem>>, vector<8x32xf32>
    %12 = arith.mulf %10, %11 : vector<8x32xf32>
    %13 = arith.addf %6, %12 : vector<8x32xf32>
    %c0_8 = arith.constant 0 : index
    %c0_9 = arith.constant 0 : index
    %14 = vector.load %arg9[%c0_8, %c0_9] : memref<8x32xf32, #tpu.memory_space<vmem>>, vector<8x32xf32>
    tpu.vector_store %arg9[%c0_8, %c0_9], %13 {strides = array<i32>} : memref<8x32xf32, #tpu.memory_space<vmem>>, vector<8x32xf32>,
    %15 = arith.mulf %10, %10 : vector<8x32xf32>
    %16 = arith.mulf %13, %13 : vector<8x32xf32>
    %17 = tpu.concatenate %16, %13 in 1 : vector<8x32xf32>, vector<8x32xf32> -> vector<8x64xf32>
    %c0_10 = arith.constant 0 : index
    %c0_11 = arith.constant 0 : index
    %18 = vector.load %arg5[%c0_10, %c0_11] : memref<4x64xf32, #tpu.memory_space<vmem>>, vector<4x64xf32>
    %cst_12 = arith.constant dense<0.000000e+00> : vector<8x4xf32>
    %19 = tpu.matmul %17, %18, %cst_12 {dimension_numbers = #tpu.dot_dimension_numbers<[1], [1], [0], [0], [0, 0, 1, 0], [], []>} : vector<8x64xf32>, vector<4x64xf32>, vector<8x4xf32> -> vector<8x4xf32>
    %c0_13 = arith.constant 0 : index
    %c0_14 = arith.constant 0 : index
    %20 = vector.load %arg7[%c0_13, %c0_14] : memref<1x4xf32, #tpu.memory_space<vmem>>, vector<1x4xf32>
    %21 = vector.broadcast %20 : vector<1x4xf32> to vector<8x4xf32>
    %22 = arith.addf %19, %21 : vector<8x4xf32>
    %cst_15 = arith.constant 0.000000e+00 : f32
    %23 = vector.broadcast %cst_15 : f32 to vector<8x4xf32>
    %24 = arith.subf %23, %22 : vector<8x4xf32>
    %cst_16 = arith.constant dense<0xFF800000> : vector<8xf32>
    %25 = vector.multi_reduction <maximumf>, %24, %cst_16 [1] : vector<8x4xf32> to vector<8xf32>
    %26 = vector.shape_cast %25 : vector<8xf32> to vector<8x1xf32>
    %27 = vector.broadcast %26 : vector<8x1xf32> to vector<8x4xf32>
    %28 = arith.subf %24, %27 : vector<8x4xf32>
    %29 = math.exp %28 : vector<8x4xf32>
    %cst_17 = arith.constant dense<0.000000e+00> : vector<8xf32>
    %30 = vector.multi_reduction <add>, %29, %cst_17 [1] : vector<8x4xf32> to vector<8xf32>
    %31 = vector.shape_cast %30 : vector<8xf32> to vector<8x1xf32>
    %32 = vector.broadcast %31 : vector<8x1xf32> to vector<8x4xf32>
    %33 = arith.divf %29, %32 : vector<8x4xf32>
    %cst_18 = arith.constant 1.000000e-10 : f32
    %34 = vector.broadcast %cst_18 : f32 to vector<8x4xf32>
    %35 = arith.addf %33, %34 : vector<8x4xf32>
    %36 = arith.mulf %6, %6 : vector<8x32xf32>
    %37 = tpu.concatenate %15, %36, %6 in 1 : vector<8x32xf32>, vector<8x32xf32>, vector<8x32xf32> -> vector<8x96xf32>
    %c0_19 = arith.constant 0 : index
    %c0_20 = arith.constant 0 : index
    %38 = vector.load %arg6[%c0_19, %c0_20] : memref<4x96xf32, #tpu.memory_space<vmem>>, vector<4x96xf32>
    %cst_21 = arith.constant dense<0.000000e+00> : vector<8x4xf32>
    %39 = tpu.matmul %37, %38, %cst_21 {dimension_numbers = #tpu.dot_dimension_numbers<[1], [1], [0], [0], [0, 0, 1, 0], [], []>} : vector<8x96xf32>, vector<4x96xf32>, vector<8x4xf32> -> vector<8x4xf32>
    %c0_22 = arith.constant 0 : index
    %c0_23 = arith.constant 0 : index
    %40 = vector.load %arg8[%c0_22, %c0_23] : memref<1x4xf32, #tpu.memory_space<vmem>>, vector<1x4xf32>
    %41 = vector.broadcast %40 : vector<1x4xf32> to vector<8x4xf32>
    %42 = arith.addf %39, %41 : vector<8x4xf32>
    %cst_24 = arith.constant 3.125000e-02 : f32
    %43 = vector.broadcast %cst_24 : f32 to vector<8x4xf32>
    %44 = arith.mulf %42, %43 : vector<8x4xf32>
    %45 = arith.mulf %35, %44 : vector<8x4xf32>
    %cst_25 = arith.constant dense<0.000000e+00> : vector<8xf32>
    %46 = vector.multi_reduction <add>, %45, %cst_25 [1] : vector<8x4xf32> to vector<8xf32>
    %47 = vector.shape_cast %46 : vector<8xf32> to vector<8x1xf32>
    %cst_26 = arith.constant 1.000000e+00 : f32
    %48 = vector.broadcast %cst_26 : f32 to vector<8x32xf32>
    %49 = arith.addf %48, %7 : vector<8x32xf32>
    %cst_27 = arith.constant dense<0.000000e+00> : vector<8xf32>
    %50 = vector.multi_reduction <add>, %49, %cst_27 [1] : vector<8x32xf32> to vector<8xf32>
    %51 = vector.shape_cast %50 : vector<8xf32> to vector<8x1xf32>
    %cst_28 = arith.constant 3.125000e-02 : f32
    %52 = vector.broadcast %cst_28 : f32 to vector<8x1xf32>
    %53 = arith.mulf %51, %52 : vector<8x1xf32>
    %54 = arith.subf %47, %53 : vector<8x1xf32>
    %cst_29 = arith.constant 5.000000e-01 : f32
    %55 = vector.broadcast %cst_29 : f32 to vector<8x1xf32>
    %56 = arith.mulf %55, %54 : vector<8x1xf32>
    %cst_30 = arith.constant dense<0.000000e+00> : vector<1xf32>
    %57 = vector.multi_reduction <add>, %56, %cst_30 [0] : vector<8x1xf32> to vector<1xf32>
    %58 = vector.shape_cast %57 : vector<1xf32> to vector<1x1xf32>
    %cst_31 = arith.constant 1.250000e-01 : f32
    %59 = vector.broadcast %cst_31 : f32 to vector<1x1xf32>
    %60 = arith.mulf %58, %59 : vector<1x1xf32>
    %cst_32 = arith.constant dense<0.000000e+00> : vector<4xf32>
    %61 = vector.multi_reduction <add>, %35, %cst_32 [0] : vector<8x4xf32> to vector<4xf32>
    %62 = vector.shape_cast %61 : vector<4xf32> to vector<1x4xf32>
    %cst_33 = arith.constant 1.250000e-01 : f32
    %63 = vector.broadcast %cst_33 : f32 to vector<1x4xf32>
    %64 = arith.mulf %62, %63 : vector<1x4xf32>
    %65 = math.log %64 : vector<1x4xf32>
    %66 = arith.mulf %64, %65 : vector<1x4xf32>
    %cst_34 = arith.constant dense<0.000000e+00> : vector<1xf32>
    %67 = vector.multi_reduction <add>, %66, %cst_34 [1] : vector<1x4xf32> to vector<1xf32>
    %68 = vector.shape_cast %67 : vector<1xf32> to vector<1x1xf32>
    %cst_35 = arith.constant 2.500000e-01 : f32
    %69 = vector.broadcast %cst_35 : f32 to vector<1x1xf32>
    %70 = arith.mulf %68, %69 : vector<1x1xf32>
    %71 = tpu.iota {dimensions = array<i32: 1>} : vector<1x128xi32>
    %c0_i32 = arith.constant 0 : i32
    %72 = vector.broadcast %c0_i32 : i32 to vector<1x128xi32>
    %73 = arith.cmpi eq, %71, %72 : vector<1x128xi32>
    %cst_36 = arith.constant 0.000000e+00 : f32
    %74 = vector.shape_cast %60 : vector<1x1xf32> to vector<1x1xf32>
    %75 = vector.broadcast %74 : vector<1x1xf32> to vector<1x128xf32>
    %76 = vector.broadcast %cst_36 : f32 to vector<1x128xf32>
    %77 = arith.select %73, %75, %76 : vector<1x128xi1>, vector<1x128xf32>
    %c1_i32 = arith.constant 1 : i32
    %78 = vector.broadcast %c1_i32 : i32 to vector<1x128xi32>
    %79 = arith.cmpi eq, %71, %78 : vector<1x128xi32>
    %cst_37 = arith.constant 0.000000e+00 : f32
    %80 = vector.shape_cast %70 : vector<1x1xf32> to vector<1x1xf32>
    %81 = vector.broadcast %80 : vector<1x1xf32> to vector<1x128xf32>
    %82 = vector.broadcast %cst_37 : f32 to vector<1x128xf32>
    %83 = arith.select %79, %81, %82 : vector<1x128xi1>, vector<1x128xf32>
    %84 = arith.addf %77, %83 : vector<1x128xf32>
    %c0_38 = arith.constant 0 : index
    %c0_39 = arith.constant 0 : index
    %85 = vector.load %arg10[%c0_38, %c0_39] : memref<1x128xf32, #tpu.memory_space<vmem>>, vector<1x128xf32>
    tpu.vector_store %arg10[%c0_38, %c0_39], %84 {strides = array<i32>} : memref<1x128xf32, #tpu.memory_space<vmem>>, vector<1x128xf32>,
    return
  }
  func.func @transform_0(%arg0: i32) -> (i32, i32) {
    %c0_i32 = arith.constant 0 : i32
    %c0_i32_0 = arith.constant 0 : i32
    %c0_i32_1 = arith.constant 0 : i32
    return %c0_i32, %c0_i32_0 : i32, i32
  }
  func.func @transform_1(%arg0: i32) -> (i32, i32) {
    %c0_i32 = arith.constant 0 : i32
    %c0_i32_0 = arith.constant 0 : i32
    %c0_i32_1 = arith.constant 0 : i32
    return %c0_i32, %c0_i32_0 : i32, i32
  }
  func.func @transform_2(%arg0: i32) -> (i32, i32) {
    %c0_i32 = arith.constant 0 : i32
    %c0_i32_0 = arith.constant 0 : i32
    %c0_i32_1 = arith.constant 0 : i32
    return %c0_i32, %c0_i32_0 : i32, i32
  }
  func.func @transform_3(%arg0: i32) -> (i32, i32) {
    %c0_i32 = arith.constant 0 : i32
    %c0_i32_0 = arith.constant 0 : i32
    %c0_i32_1 = arith.constant 0 : i32
    return %c0_i32, %c0_i32_0 : i32, i32
  }
  func.func @transform_4(%arg0: i32) -> (i32, i32) {
    %c0_i32 = arith.constant 0 : i32
    %c0_i32_0 = arith.constant 0 : i32
    %c0_i32_1 = arith.constant 0 : i32
    return %c0_i32, %c0_i32_0 : i32, i32
  }
  func.func @transform_5(%arg0: i32) -> (i32, i32) {
    %c0_i32 = arith.constant 0 : i32
    %c0_i32_0 = arith.constant 0 : i32
    %c0_i32_1 = arith.constant 0 : i32
    return %c0_i32, %c0_i32_0 : i32, i32
  }
  func.func @transform_6(%arg0: i32) -> (i32, i32) {
    %c0_i32 = arith.constant 0 : i32
    %c0_i32_0 = arith.constant 0 : i32
    %c0_i32_1 = arith.constant 0 : i32
    return %c0_i32, %c0_i32_0 : i32, i32
  }
  func.func @transform_7(%arg0: i32) -> (i32, i32) {
    %c0_i32 = arith.constant 0 : i32
    %c0_i32_0 = arith.constant 0 : i32
    %c0_i32_1 = arith.constant 0 : i32
    return %c0_i32, %c0_i32_0 : i32, i32
  }
  func.func @transform_8(%arg0: i32) -> (i32, i32) {
    %c0_i32 = arith.constant 0 : i32
    %c0_i32_0 = arith.constant 0 : i32
    %c0_i32_1 = arith.constant 0 : i32
    return %c0_i32, %c0_i32_0 : i32, i32
  }
  func.func @transform_9(%arg0: i32) -> (i32, i32) {
    %c0_i32 = arith.constant 0 : i32
    %c0_i32_0 = arith.constant 0 : i32
    %c0_i32_1 = arith.constant 0 : i32
    return %c0_i32, %c0_i32_0 : i32, i32
  }
}

</mosaic_0001>

<bundles_post_ra>
// kernel: tpu_custom_call.1
= control target key start
LH: loop header
LB: loop body
LE: loop exit
PB: predicated region body
PF: predicated region fallthrough
CT: control target
= control target key end

     0   :  { %15 = vsyncpa [#allocation3], 0  ;;  %vm49_vm0 = vcmask 261120   ;;  %v580_v2 = vmov 0.0|0.0   ;;  %vm581_vm2 = vmmov 0   ;;  %v582_v5 = vmov 0.0   ;;  %s743_s0 = inlined_call_operand.vmem [shape: f32[8,32], index: 0, kind: input, shape index: {}]   ;;  %s744_s1 = inlined_call_operand.vmem [shape: f32[64,32], index: 1, kind: input, shape index: {}]   ;;  %s745_s2 = inlined_call_operand.vmem [shape: f32[1,64], index: 2, kind: input, shape index: {}]   ;;  %s746_s3 = inlined_call_operand.vmem [shape: f32[8,32], index: 3, kind: input, shape index: {}]   ;;  %s747_s4 = inlined_call_operand.vmem [shape: f32[4,64], index: 4, kind: input, shape index: {}]   ;;  %s748_s5 = inlined_call_operand.vmem [shape: f32[4,96], index: 5, kind: input, shape index: {}]   ;;  %s749_s6 = inlined_call_operand.vmem [shape: f32[1,4], index: 6, kind: input, shape index: {}]   ;;  %s750_s7 = inlined_call_operand.vmem [shape: f32[1,4], index: 7, kind: input, shape index: {}]   ;;  %s751_s8 = inlined_call_operand.hbm [shape: f32[8,32], index: 8, kind: output, shape index: {0}]   ;;  %s752_s9 = inlined_call_operand.hbm [shape: f32[1,128], index: 9, kind: output, shape index: {1}]  }
   0x1   :  { %v34_v0 = vld [vmem:[%s744_s1] sm:$0xff]  ;;  %v35_v1 = vld [vmem:[%s744_s1 + $0x8] sm:$0xff]  ;;  %500 = vmatprep.subr.bf16.mxu0 %v580_v2  ;;  %vm646_vm1 = vmpackc.low %vm49_vm0, %vm49_vm0  ;;  %487 = vmatprep.mubr.msk.f32.mxu0 %vm581_vm2, %v582_v5  ;;  %s583_s19 = smov 32  }
   0x2   :  { %v501_v3 = vpack.c.bf16 %v35_v1, %v34_v0  ;;  %490 = vmatprep.subr.mxu1 %v582_v5  ;;  %v150_v6 = vld [vmem:[%s746_s3] sm:$0xff]  ;;  %492 = vmatprep.mubr.msk.f32.mxu1 %vm581_vm2, %v582_v5  ;;  %v36_v7 = vld [vmem:[%s744_s1 + $0x10] sm:$0xff]  ;;  %v37_v8 = vld [vmem:[%s744_s1 + $0x18] sm:$0xff] }
   0x3   :  { %152 = vrot.lane.b32.xlu0 %v150_v6, %s583_s19 }
   0x4   :  { %503 = vmatpush3.bf16.xpose.msk.msra.mxu0 %vm646_vm1, %v501_v3 }
   0x5   :  { %504 = vmatprep.subr.bf16.mxu0 %v580_v2 }
   0x6   :  { %16 = vsyncpa [#allocation5], 0  ;;  %v505_v9 = vpack.c.bf16 %v37_v8, %v36_v7  ;;  %v38_v10 = vld [vmem:[%s744_s1 + $0x20] sm:$0xff]  ;;  %v39_v11 = vld [vmem:[%s744_s1 + $0x28] sm:$0xff]  ;;  %vm177_vm3 = vcmask 523264   ;;  %vm291_vm4 = vcmask 785408  }
   0x7   :  { %v509_v12 = vpack.c.bf16 %v39_v11, %v38_v10  ;;  %v40_v13 = vld [vmem:[%s744_s1 + $0x30] sm:$0xff]  ;;  %v41_v14 = vld [vmem:[%s744_s1 + $0x38] sm:$0xff]  ;;  %v33_v16 = vld [vmem:[%s743_s0] sm:$0xff]  ;;  %s584_s0 = smov 96   ;;  %vm255_vm5 = vcmask 31744  }
   0x8   :  { %v513_v15 = vpack.c.bf16 %v41_v14, %v40_v13  ;;  %v442_v17 = vld [vmem:[%s745_s2] ss:$0 sm:$0xff]  ;;  %s585_s2 = smov 64  }
   0x9   :  { %v169_v25 = vld [vmem:[%s747_s4] sm:$0xf] }
   0xa   :  { %491 = vmatpush3.xpose.msk.msra.mxu1 %vm177_vm3, %v169_v25  ;;  %v283_v33 = vld [vmem:[%s748_s5] sm:$0xf] }
   0xb   :  { %495 = vmatprep.subr.mxu1 %v582_v5  ;;  %v452_v40 = vld [vmem:[%s749_s6] ss:$0 sm:$0xff] }
   0xc   :  { %507 = vmatpush3.bf16.xpose.msk.msra.mxu0 %vm646_vm1, %v505_v9  ;;  %v455_v57 = vld [vmem:[%s750_s7] ss:$0 sm:$0xff]  ;;  %s586_s7 = smov [#allocation2]  }
   0xd   :  { %508 = vmatprep.subr.bf16.mxu0 %v580_v2  ;;  %s420_s14 = sshll.u32 %s586_s7, 4  ;;  %s421_s14 = int_to_ptr.vmem [resolvable:$true] %s420_s14 }
   0xe   :  { %s532_s15 = scalar_lea.vmem %s421_s14, 128  ;;  %p537_p1 = scmp.lt.s32.totalorder %s421_s14, %s421_s14 }
   0xf   :  { %p533_p0 = scmp.ne.s32.totalorder %s421_s14, %s532_s15  ;;  %p538_p2 = scmp.lt.s32.totalorder %s532_s15, %s532_s15 }
  0x11   :  { %p539_p3 = por %p538_p2, %p537_p1 }
  0x13   :  { %p540_p4 = pnand %p539_p3, %p533_p0 }
  0x14   :  { %511 = vmatpush3.bf16.xpose.msk.msra.mxu0 %vm646_vm1, %v509_v12 }
  0x15   :  { %512 = vmatprep.subr.bf16.mxu0 %v580_v2 }
  0x1c   :  { %515 = vmatpush3.bf16.xpose.msk.msra.mxu0 %vm646_vm1, %v513_v15 }
  0x23   :  { %488 = vmatmul.mubr.msk.f32.vlgmr.msra.gmra.mrb[0].mxu0 %vm49_vm0, %v33_v16 }
  0x75   :  { %v153_v23 = vpop.permute.xlu0 %152 }
  0xf6   :  { %v143_v18 = vpop.f32.mrb[0].mxu0 }
  0xf7   :  { %v144_v19 = vadd.f32 %v442_v17, %v143_v18  ;;  %v489_v20 = vpop.f32.mrb[1].mxu0 }
  0xf9   :  { %v147_v21 = vmul.f32 0.5, %v144_v19  ;;  %v268_v27 = vmul.f32 %v144_v19, %v144_v19  ;;  %v373_v48 = vadd.f32 1.0, %v144_v19 }
  0xfb   :  { %v148_v22 = vmul.f32 1.442695, %v147_v21 }
  0xfd   :  { %524 = vpow2.f32 %v148_v22 }
 0x107   :  { %v525_v24 = vpop.eup %524 }
 0x108   :  { %v155_v26 = vmul.f32 %v525_v24, %v153_v23  ;;  %v162_v30 = vmul.f32 %v525_v24, %v525_v24 }
 0x10a   :  { %157 = vrot.lane.b32.xlu0 %v155_v26, %s584_s0 }
 0x10e   :  { %274 = vrot.lane.b32.xlu0 %v268_v27, %s583_s19 }
 0x17c   :  { %v158_v28 = vpop.permute.xlu0 %157 }
 0x17d   :  { %v160_v29 = vadd.f32 %v158_v28, %v144_v19 }
 0x17f   :  { %161 = vst.msk [vmem:[#allocation2] sm:$0xff] %vm49_vm0, %v160_v29  ;;  %165 = vrot.lane.b32.xlu1 %v160_v29, %s583_s19  ;;  %v163_v31 = vmul.f32 %v160_v29, %v160_v29 }
 0x180   :  { %v275_v36 = vpop.permute.xlu0 %274 }
 0x183   :  { %270 = vrot.lane.b32.xlu1 %v162_v30, %s584_s0 }
 0x187   :  { %278 = vrot.lane.b32.xlu1 %v144_v19, %s585_s2 }
 0x1f1   :  { %v166_v32 = vpop.permute.xlu1 %165 }
 0x1f2   :  { %v168_v34 = vsel %vm49_vm0, %v163_v31, %v166_v32 }
 0x1f3   :  { %493 = vmatmul.mubr.msk.f32.vlgmr.msra.gmra.mrb[0].mxu1 %vm177_vm3, %v168_v34 }
 0x1f4   :  { %496 = vmatpush3.xpose.msk.msra.mxu1 %vm291_vm4, %v283_v33  ;;  %497 = vmatprep.mubr.msk.f32.mxu1 %vm581_vm2, %v582_v5 }
 0x1f5   :  { %v271_v35 = vpop.permute.xlu1 %270 }
 0x1f6   :  { %v281_v37 = vsel %vm49_vm0, %v271_v35, %v275_v36 }
 0x1f9   :  { %v279_v38 = vpop.permute.xlu1 %278 }
 0x1fa   :  { %v282_v39 = vsel %vm177_vm3, %v281_v37, %v279_v38 }
 0x1fb   :  { %498 = vmatmul.mubr.msk.f32.vlgmr.msra.gmra.mrb[2].mxu1 %vm291_vm4, %v282_v39 }
 0x2c6   :  { %v250_v41 = vpop.f32.mrb[0].mxu1 }
 0x2c7   :  { %v251_v42 = vadd.f32 %v452_v40, %v250_v41  ;;  %v494_v43 = vpop.f32.mrb[1].mxu1 }
 0x2c9   :  { %v254_v44 = vsub.f32 0.0, %v251_v42 }
 0x2cb   :  { %v256_v45 = vsel %vm255_vm5, %v254_v44, -inf }
 0x2cc   :  { %257 = vmax.xlane.f32.xlu0 %v256_v45 }
 0x2ce   :  { %v364_v46 = vpop.f32.mrb[2].mxu1 }
 0x2cf   :  { %v499_v47 = vpop.f32.mrb[3].mxu1  ;;  %v365_v58 = vadd.f32 %v455_v57, %v364_v46 }
 0x2d1   :  { %v368_v61 = vmul.f32 0.03125, %v365_v58 }
 0x2e2   :  { %375 = vrot.lane.b32.xlu0 %v373_v48, %s584_s0 }
 0x359   :  { %v258_v49 = vpop.xlane.xlu0 %257 }
 0x35a   :  { %v259_v50 = vsub.f32 %v254_v44, %v258_v49 }
 0x35c   :  { %v260_v51 = vmul.f32 1.442695, %v259_v50 }
 0x35d   :  { %v376_v54 = vpop.permute.xlu0 %375 }
 0x35e   :  { %526 = vpow2.f32 %v260_v51  ;;  %v378_v55 = vsel %vm49_vm0, %v376_v54, 0.0 }
 0x368   :  { %v527_v52 = vpop.eup %526 }
 0x369   :  { %v262_v53 = vsel %vm255_vm5, %v527_v52, 0.0 }
 0x36a   :  { %263 = vadd.xlane.f32.xlu1 %v262_v53 }
 0x36e   :  { %379 = vadd.xlane.f32.xlu1 %v378_v55 }
 0x3f7   :  { %v264_v56 = vpop.xlane.xlu1 %263 }
 0x3f8   :  { %528 = vrcp.f32 %v264_v56 }
 0x402   :  { %v529_v59 = vpop.eup %528 }
 0x403   :  { %v266_v60 = vmul.f32 %v529_v59, %v527_v52 }
 0x405   :  { %v267_v62 = vadd.f32 1e-10, %v266_v60 }
 0x407   :  { %v369_v63 = vmul.f32 %v368_v61, %v267_v62  ;;  %v391_v0 = vsel %vm255_vm5, %v267_v62, 0.0 }
 0x408   :  { %v392_v1 = vrot.slane %v391_v0, 4 }
 0x409   :  { %v370_v2 = vsel %vm255_vm5, %v369_v63, 0.0 }
 0x40a   :  { %v393_v3 = vadd.f32 %v392_v1, %v391_v0  ;;  %371 = vadd.xlane.f32.xlu1 %v370_v2 }
 0x40c   :  { %v394_v4 = vrot.slane %v393_v3, 2 }
 0x40e   :  { %v395_v5 = vadd.f32 %v394_v4, %v393_v3 }
 0x410   :  { %v396_v6 = vrot.slane %v395_v5, 1 }
 0x412   :  { %v397_v7 = vadd.f32 %v396_v6, %v395_v5 }
 0x414   :  { %v398_v8 = vmul.f32 0.125, %v397_v7 }
 0x416   :  { %530 = vlog2.f32 %v398_v8 }
 0x420   :  { %v531_v9 = vpop.eup %530 }
 0x421   :  { %v400_v10 = vmul.f32 0.6931472, %v531_v9 }
 0x423   :  { %v401_v11 = vmul.f32 %v400_v10, %v398_v8 }
 0x425   :  { %v402_v12 = vsel %vm255_vm5, %v401_v11, 0.0 }
 0x426   :  { %403 = vadd.xlane.f32.xlu1 %v402_v12 }
 0x427   :  { %543 = shalt.err (!%p540_p4)
}
 0x428   :  { %s544_s18 = scalar_lea.hbm %s751_s8, 128 }
 0x429   :  { %p545_p5 = scmp.ne.s32.totalorder %s751_s8, %s544_s18  ;;  %p548_p6 = scmp.lt.u32.totalorder %s544_s18, %s751_s8 }
 0x42b   :  { %p550_p7 = pnand %p548_p6, %p545_p5 }
 0x42d   :  { %553 = shalt.err (!%p550_p7)
}
 0x42e   :  { %423 = dma.vmem_to_hbm [thread:$0]  %s421_s14, 128, %s751_s8, [#allocation3]   ;;  %v380_v13 = vpop.xlane.xlu1 %379  ;;  %v406_v23 = vlaneseq }
 0x42f   :  { %v381_v14 = vmul.f32 0.03125, %v380_v13  ;;  %s587_s24 = smov [#allocation4]  }
 0x430   :  { %v407_v25 = vand.u32 127, %v406_v23  ;;  %s430_s8 = sshll.u32 %s587_s24, 4  ;;  %s431_s8 = int_to_ptr.vmem [resolvable:$true] %s430_s8 }
 0x431   :  { %s554_s25 = scalar_lea.vmem %s431_s8, 16  ;;  %s558_s26 = scalar_lea.vmem %s431_s8, 32 }
 0x432   :  { %vm410_vm6 = vcmp.eq.s32.totalorder %v407_v25, 1  ;;  %vm408_vm7 = vcmp.eq.s32.totalorder %v407_v25, 0  ;;  %p555_p8 = scmp.ne.s32.totalorder %s431_s8, %s554_s25  ;;  %p559_p9 = scmp.lt.s32.totalorder %s431_s8, %s431_s8 }
 0x433   :  { %p560_p10 = scmp.lt.s32.totalorder %s558_s26, %s554_s25 }
 0x435   :  { %p561_p11 = por %p560_p10, %p559_p9 }
 0x437   :  { %p562_p12 = pnand %p561_p11, %p555_p8 }
 0x497   :  { %v372_v15 = vpop.xlane.xlu1 %371 }
 0x498   :  { %v382_v16 = vsub.f32 %v372_v15, %v381_v14 }
 0x49a   :  { %v383_v17 = vmul.f32 0.5, %v382_v16 }
 0x49c   :  { %v384_v18 = vrot.slane %v383_v17, 4 }
 0x49e   :  { %v385_v19 = vadd.f32 %v384_v18, %v383_v17 }
 0x4a0   :  { %v386_v20 = vrot.slane %v385_v19, 2 }
 0x4a2   :  { %v387_v21 = vadd.f32 %v386_v20, %v385_v19 }
 0x4a4   :  { %v388_v22 = vrot.slane %v387_v21, 1 }
 0x4a6   :  { %v389_v24 = vadd.f32 %v388_v22, %v387_v21 }
 0x4a8   :  { %v390_v26 = vmul.f32 0.125, %v389_v24 }
 0x4aa   :  { %v409_v30 = vsel %vm408_vm7, %v390_v26, 0.0 }
 0x4b3   :  { %v404_v27 = vpop.xlane.xlu1 %403 }
 0x4b4   :  { %v405_v28 = vmul.f32 0.25, %v404_v27 }
 0x4b6   :  { %v411_v29 = vsel %vm410_vm6, %v405_v28, 0.0 }
 0x4b7   :  { %v412_v31 = vadd.f32 %v411_v29, %v409_v30 }
 0x4b9   :  { %413 = vst [vmem:[#allocation4] sm:$0x1] %v412_v31 }
 0x4ba   :  { %565 = shalt.err (!%p562_p12)
}
 0x4bb   :  { %s566_s29 = scalar_lea.hbm %s752_s9, 16 }
 0x4bc   :  { %p567_p13 = scmp.ne.s32.totalorder %s752_s9, %s566_s29  ;;  %p570_p0 = scmp.lt.u32.totalorder %s566_s29, %s752_s9 }
 0x4be   :  { %p572_p1 = pnand %p570_p0, %p567_p13 }
 0x4c0   :  { %575 = shalt.err (!%p572_p1)
}
 0x4c1   :  { %433 = dma.vmem_to_hbm [thread:$0]  %s431_s8, 16, %s752_s9, [#allocation5]  }
 0x4c2   :  { %576 = dma.done.wait [#allocation3], 128  }
 0x4c3   :  { %577 = vsyncadd [#allocation3], 4294967168 }
 0x4c4   :  { %578 = dma.done.wait [#allocation5], 16  }
 0x4c5   :  { %579 = vsyncadd [#allocation5], 4294967280 }
 0x4c6   :  { %440 = vsyncpa [#allocation3], 1 }
 0x4c7   :  { %441 = vsyncpa [#allocation5], 1 }

</bundles_post_ra>
